<compile_context>
chip_gen: v5e
topology: v5e:2x2
jax: 0.10.0
libtpu: 0.0.40
codegen_flags: <defaults>
</compile_context>

<pallas_src>
import functools
import math

import jax
import jax.numpy as jnp
from jax.experimental import pallas as pl
from jax.experimental.pallas import tpu as pltpu


_INV_SQRT2 = 0.7071067811865476


def _round_up(x, m):
    return ((x + m - 1) // m) * m


def _gelu_exact(y):
    # exact (erf) GELU in f32, matching torch ACT2FN["gelu"]
    return 0.5 * y * (1.0 + jax.lax.erf(y * jnp.float32(_INV_SQRT2)))


def _intermediate_kernel_fused(x_ref, w_ref, b_ref, o_ref):
    """Single-pass matmul + bias + GELU (used when the whole K fits in one tile).

    Grid = (N_tiles, M_tiles); weight block index depends only on j, so for a fixed j the
    weight tile stays VMEM-resident across the inner M loop (fetched once per j).
    """
    y = jnp.dot(x_ref[...], w_ref[...], preferred_element_type=jnp.float32)
    y = y + b_ref[...].astype(jnp.float32)
    o_ref[...] = _gelu_exact(y).astype(o_ref.dtype)


def _intermediate_kernel_acc(x_ref, w_ref, b_ref, o_ref, acc_ref):
    """Accumulating variant for K_pad > one tile.

    Grid = (N_tiles, M_tiles, K_tiles); K is the reduction axis (last, "arbitrary").
    acc_ref is a float32 VMEM accumulator persisting across the K axis.
    """
    k = pl.program_id(2)

    @pl.when(k == 0)
    def _():
        acc_ref[...] = jnp.zeros_like(acc_ref)

    acc_ref[...] += jnp.dot(
        x_ref[...], w_ref[...], preferred_element_type=jnp.float32
    )

    @pl.when(k == pl.num_programs(2) - 1)
    def _():
        y = acc_ref[...] + b_ref[...].astype(jnp.float32)
        o_ref[...] = _gelu_exact(y).astype(o_ref.dtype)


def _choose_tiles(M, K_pad, N_pad, width, max_k_tile=None):
    """MXU-aligned tiles.  K_pad / N_pad are the padded weight dims (multiples of 128)."""
    # M tile: up to 512 rows; 16-row aligned so bf16 sublane packing is fully used.
    tm = min(512, _round_up(M, 16))
    # K tile: full padded K when it fits (K reduction axis disappears); otherwise the
    # largest 128-multiple divisor of K_pad under the cap.
    k_cap = 2048 if max_k_tile is None else int(max_k_tile)
    if K_pad <= k_cap:
        tk = K_pad
    else:
        tk = max(t for t in (2048, 1024, 512, 256, 128)
                 if t <= k_cap and K_pad % t == 0)
    # N tile: largest of (1024, 512, 256, 128) dividing N_pad, clamped to the active
    # width so tiny widths don't allocate oversized tiles.  128 always divides N_pad.
    n_target = min(1024, _round_up(width, 128))
    tn = max(t for t in (1024, 512, 256, 128)
             if t <= n_target and N_pad % t == 0)
    return tm, tk, tn


@functools.partial(
    jax.jit, static_argnames=("width", "compute_dtype", "out_dtype", "max_k_tile")
)
def super_bert_intermediate_fwd(hidden_states, w_pad, b_pad, *, width,
                                compute_dtype, out_dtype, max_k_tile=None):
    """hidden_states: (B, S, H); w_pad: (K_pad, N_pad) pre-transposed + pre-padded weight
    (zeros beyond (H, intermediate)); b_pad: (1, N_pad) f32 pre-padded bias."""
    B, S, H = hidden_states.shape
    K_pad, N_pad_full = w_pad.shape
    M = B * S

    tm, tk, tn = _choose_tiles(M, K_pad, N_pad_full, width, max_k_tile)
    M_pad = _round_up(M, tm)
    m_tiles = M_pad // tm
    k_tiles = K_pad // tk
    n_tiles = pl.cdiv(width, tn)
    N_out = n_tiles * tn          # <= N_pad_full because tn divides N_pad_full

    # Glue: flatten tokens, cast, pad only if the padded dims actually differ.
    x2d = hidden_states.reshape(M, H).astype(compute_dtype)
    if M_pad != M or K_pad != H:
        x2d = jnp.pad(x2d, ((0, M_pad - M), (0, K_pad - H)))

    cb = jnp.dtype(compute_dtype).itemsize
    ob = jnp.dtype(out_dtype).itemsize

    # VMEM budget: double-buffered x / w / out tiles, bias row, f32 tile-sized temp/acc.
    vmem_est = (
        2 * tm * tk * cb
        + 2 * tk * tn * cb
        + 2 * tn * 4
        + 2 * tm * tn * ob
        + tm * tn * 4
    )
    vmem_limit = int(min(max(2 * vmem_est, 32 * 1024 * 1024), 48 * 1024 * 1024))

    cost = pl.CostEstimate(
        flops=2 * M_pad * K_pad * N_out,
        transcendentals=M_pad * N_out,
        bytes_accessed=int(M_pad * K_pad * cb * n_tiles      # x re-read per N tile
                           + K_pad * N_out * cb              # weight read once
                           + M_pad * N_out * ob              # output write
                           + N_out * 4),                     # bias
    )

    if k_tiles == 1:
        out = pl.pallas_call(
            _intermediate_kernel_fused,
            out_shape=jax.ShapeDtypeStruct((M_pad, N_out), out_dtype),
            grid_spec=pltpu.PrefetchScalarGridSpec(
                num_scalar_prefetch=0,
                grid=(n_tiles, m_tiles),
                in_specs=[
                    pl.BlockSpec((tm, tk), lambda j, i: (i, 0)),   # activations
                    pl.BlockSpec((tk, tn), lambda j, i: (0, j)),   # weight (const over i)
                    pl.BlockSpec((1, tn), lambda j, i: (0, j)),    # bias row
                ],
                out_specs=pl.BlockSpec((tm, tn), lambda j, i: (i, j)),
            ),
            compiler_params=pltpu.CompilerParams(
                dimension_semantics=("parallel", "parallel"),
                vmem_limit_bytes=vmem_limit,
            ),
            cost_estimate=cost,
        )(x2d, w_pad, b_pad)
    else:
        out = pl.pallas_call(
            _intermediate_kernel_acc,
            out_shape=jax.ShapeDtypeStruct((M_pad, N_out), out_dtype),
            grid_spec=pltpu.PrefetchScalarGridSpec(
                num_scalar_prefetch=0,
                grid=(n_tiles, m_tiles, k_tiles),
                in_specs=[
                    pl.BlockSpec((tm, tk), lambda j, i, k: (i, k)),   # activations
                    pl.BlockSpec((tk, tn), lambda j, i, k: (k, j)),   # weight stream
                    pl.BlockSpec((1, tn), lambda j, i, k: (0, j)),    # bias row
                ],
                out_specs=pl.BlockSpec((tm, tn), lambda j, i, k: (i, j)),
                scratch_shapes=[pltpu.VMEM((tm, tn), jnp.float32)],
            ),
            compiler_params=pltpu.CompilerParams(
                dimension_semantics=("parallel", "parallel", "arbitrary"),
                vmem_limit_bytes=vmem_limit,
            ),
            cost_estimate=cost,
        )(x2d, w_pad, b_pad)

    return out[:M, :width].reshape(B, S, width)


class SuperBertIntermediatePallas:
    """JAX/Pallas port of SuperBertIntermediate (DynamicLinear slice + GELU)."""

    def __init__(self, hidden_size, intermediate_size, key, *,
                 compute_dtype=jnp.bfloat16, out_dtype=None, max_k_tile=None):
        self.hidden_size = hidden_size
        self.intermediate_size = intermediate_size
        self.active_width_ratio = 1.0
        self.compute_dtype = compute_dtype
        self.out_dtype = out_dtype if out_dtype is not None else compute_dtype
        self._max_k_tile = max_k_tile   # testing/tuning knob: force a K split

        k_w, k_b = jax.random.split(key)
        bound = 1.0 / math.sqrt(hidden_size)
        # torch.nn.Linear layout (intermediate, hidden); kept in f32 for reference/compat.
        self.weight = jax.random.uniform(
            k_w, (intermediate_size, hidden_size), jnp.float32, -bound, bound
        )
        self.bias = jax.random.uniform(
            k_b, (intermediate_size,), jnp.float32, -bound, bound
        )

        # Kernel-side parameters prepared ONCE at init (no per-call copies):
        #   weight -> transposed to (H, I), zero-padded to lane-dense multiples of 128,
        #             cast to the compute dtype.
        #   bias   -> zero-padded, f32, shaped (1, N_pad).
        k_pad = _round_up(hidden_size, 128)
        n_pad = _round_up(intermediate_size, 128)
        w_t = jnp.transpose(self.weight)
        if (k_pad, n_pad) != (hidden_size, intermediate_size):
            w_t = jnp.pad(w_t, ((0, k_pad - hidden_size), (0, n_pad - intermediate_size)))
        self.w_pad = w_t.astype(compute_dtype)
        b = self.bias
        if n_pad != intermediate_size:
            b = jnp.pad(b, (0, n_pad - intermediate_size))
        self.b_pad = b.astype(jnp.float32).reshape(1, n_pad)

    def __call__(self, hidden_states, width_prune_ratio=None):
        if width_prune_ratio is None:
            width_prune_ratio = self.active_width_ratio
        width = int(self.intermediate_size * width_prune_ratio)
        width = max(0, min(width, self.intermediate_size))
        B, S, _ = hidden_states.shape
        if width == 0:
            # Degenerate pruned width: empty feature dimension.
            return jnp.zeros((B, S, 0), dtype=self.out_dtype)
        return super_bert_intermediate_fwd(
            hidden_states, self.w_pad, self.b_pad,
            width=width, compute_dtype=self.compute_dtype, out_dtype=self.out_dtype,
            max_k_tile=self._max_k_tile,
        )


def _reference(x, weight, bias, width, precision=None):
    y = jnp.einsum("bsh,nh->bsn", x, weight[:width, :], precision=precision) + bias[:width]
    return 0.5 * y * (1.0 + jax.lax.erf(y * jnp.float32(_INV_SQRT2)))


if __name__ == "__main__":
    key = jax.random.PRNGKey(0)
    k_mod, k_x, k_mod2, k_x2 = jax.random.split(key, 4)

    batch, seq, hidden, intermediate = 2, 8, 32, 64
    x = jax.random.normal(k_x, (batch, seq, hidden), jnp.float32)

    # --- parity path: f32 params/compute, exact match vs reference (fused kernel) ---
    mod_f32 = SuperBertIntermediatePallas(
        hidden, intermediate, k_mod, compute_dtype=jnp.float32, out_dtype=jnp.float32,
    )
    ratio_a = 0.5  # width = 32 (padded to lane-dense 128 inside the kernel)
    width_a = int(intermediate * ratio_a)
    out_a = jax.block_until_ready(mod_f32(x, width_prune_ratio=ratio_a))
    ref_a = _reference(x, mod_f32.weight, mod_f32.bias, width_a)
    assert out_a.shape == (batch, seq, width_a)
    assert jnp.allclose(out_a, ref_a, atol=5e-5, rtol=5e-5)

    # --- production path: bf16 params/compute/output, non-128-aligned width ---------
    mod_bf16 = SuperBertIntermediatePallas(
        hidden, intermediate, k_mod, compute_dtype=jnp.bfloat16, out_dtype=jnp.bfloat16,
    )
    ratio_b = 0.625  # width = 40 (odd width: exercises padding + remainder slicing)
    width_b = int(intermediate * ratio_b)
    out_b = jax.block_until_ready(mod_bf16(x, width_prune_ratio=ratio_b))
    x_bf = x.astype(jnp.bfloat16).astype(jnp.float32)
    w_bf = mod_bf16.weight.astype(jnp.bfloat16).astype(jnp.float32)
    ref_b = _reference(x_bf, w_bf, mod_bf16.bias, width_b)
    assert out_b.shape == (batch, seq, width_b)
    assert jnp.allclose(out_b.astype(jnp.float32), ref_b, atol=3e-2, rtol=3e-2)

    # --- K-split path: forced small K tile exercises the accumulating kernel --------
    hidden2, intermediate2 = 256, 512
    x2 = jax.random.normal(k_x2, (batch, seq, hidden2), jnp.float32)
    mod_ksplit = SuperBertIntermediatePallas(
        hidden2, intermediate2, k_mod2,
        compute_dtype=jnp.float32, out_dtype=jnp.float32, max_k_tile=128,
    )
    out_c = jax.block_until_ready(mod_ksplit(x2))  # width_prune_ratio defaults to 1.0
    ref_c = _reference(x2, mod_ksplit.weight, mod_ksplit.bias, intermediate2,
                       precision=jax.lax.Precision.HIGHEST)
    assert out_c.shape == (batch, seq, intermediate2)
    assert jnp.allclose(out_c, ref_c, atol=1e-3, rtol=1e-3)

    print("KERNEL_OK")
</pallas_src>

<mosaic_0001>
module attributes {stable_mosaic.version = 11 : i64} {
  func.func @_intermediate_kernel_fused(%arg0: i32, %arg1: i32, %arg2: memref<16x128xf32, #tpu.memory_space<vmem>>, %arg3: memref<128x128xf32, #tpu.memory_space<vmem>>, %arg4: memref<1x128xf32, #tpu.memory_space<vmem>>, %arg5: memref<16x128xf32, #tpu.memory_space<vmem>>) attributes {dimension_semantics = [#tpu.dimension_semantics<parallel>, #tpu.dimension_semantics<parallel>], iteration_bounds = array<i64: 1, 1>, scalar_prefetch = 0 : i64, scratch_operands = 0 : i64, tpu.core_type = #tpu.core_type<tc>, window_params = [{transform_indices = @transform_0, window_bounds = array<i64: 16, 128>}, {transform_indices = @transform_1, window_bounds = array<i64: 128, 128>}, {transform_indices = @transform_2, window_bounds = array<i64: 1, 128>}, {transform_indices = @transform_3, window_bounds = array<i64: 16, 128>}]} {
    %c0 = arith.constant 0 : index
    %c0_0 = arith.constant 0 : index
    %0 = vector.load %arg2[%c0, %c0_0] : memref<16x128xf32, #tpu.memory_space<vmem>>, vector<16x128xf32>
    %c0_1 = arith.constant 0 : index
    %c0_2 = arith.constant 0 : index
    %1 = vector.load %arg3[%c0_1, %c0_2] : memref<128x128xf32, #tpu.memory_space<vmem>>, vector<128x128xf32>
    %cst = arith.constant dense<0.000000e+00> : vector<16x128xf32>
    %2 = tpu.matmul %0, %1, %cst {dimension_numbers = #tpu.dot_dimension_numbers<[1], [0], [0], [1], [0, 0, 1, 1], [], []>} : vector<16x128xf32>, vector<128x128xf32>, vector<16x128xf32> -> vector<16x128xf32>
    %c0_3 = arith.constant 0 : index
    %c0_4 = arith.constant 0 : index
    %3 = vector.load %arg4[%c0_3, %c0_4] : memref<1x128xf32, #tpu.memory_space<vmem>>, vector<1x128xf32>
    %4 = vector.broadcast %3 : vector<1x128xf32> to vector<16x128xf32>
    %5 = arith.addf %2, %4 : vector<16x128xf32>
    %cst_5 = arith.constant 5.000000e-01 : f32
    %6 = vector.broadcast %cst_5 : f32 to vector<16x128xf32>
    %7 = arith.mulf %6, %5 : vector<16x128xf32>
    %cst_6 = arith.constant 0.707106769 : f32
    %8 = vector.broadcast %cst_6 : f32 to vector<16x128xf32>
    %9 = arith.mulf %5, %8 : vector<16x128xf32>
    %10 = math.erf %9 : vector<16x128xf32>
    %cst_7 = arith.constant 1.000000e+00 : f32
    %11 = vector.broadcast %cst_7 : f32 to vector<16x128xf32>
    %12 = arith.addf %11, %10 : vector<16x128xf32>
    %13 = arith.mulf %7, %12 : vector<16x128xf32>
    %c0_8 = arith.constant 0 : index
    %c0_9 = arith.constant 0 : index
    %14 = vector.load %arg5[%c0_8, %c0_9] : memref<16x128xf32, #tpu.memory_space<vmem>>, vector<16x128xf32>
    tpu.vector_store %arg5[%c0_8, %c0_9], %13 {strides = array<i32>} : memref<16x128xf32, #tpu.memory_space<vmem>>, vector<16x128xf32>,
    return
  }
  func.func @transform_0(%arg0: i32, %arg1: i32) -> (i32, i32) {
    %c0_i32 = arith.constant 0 : i32
    %c0_i32_0 = arith.constant 0 : i32
    return %arg1, %c0_i32 : i32, i32
  }
  func.func @transform_1(%arg0: i32, %arg1: i32) -> (i32, i32) {
    %c0_i32 = arith.constant 0 : i32
    %c0_i32_0 = arith.constant 0 : i32
    return %c0_i32, %arg0 : i32, i32
  }
  func.func @transform_2(%arg0: i32, %arg1: i32) -> (i32, i32) {
    %c0_i32 = arith.constant 0 : i32
    %c0_i32_0 = arith.constant 0 : i32
    return %c0_i32, %arg0 : i32, i32
  }
  func.func @transform_3(%arg0: i32, %arg1: i32) -> (i32, i32) {
    %c0_i32 = arith.constant 0 : i32
    return %arg1, %arg0 : i32, i32
  }
}

</mosaic_0001>

<bundles_post_ra>
// kernel: super_bert_intermediate_fwd.1
= control target key start
LH: loop header
LB: loop body
LE: loop exit
PB: predicated region body
PF: predicated region fallthrough
CT: control target
= control target key end

     0   :  { %8 = vsyncpa [#allocation3], 0  ;;  %s222_s15 = smov [#allocation2]   ;;  %s223_s17 = smov 128   ;;  %s281_s0 = inlined_call_operand.vmem [shape: f32[16,128], index: 0, kind: input, shape index: {}]   ;;  %s282_s1 = inlined_call_operand.hbm [shape: f32[128,128], index: 1, kind: input, shape index: {}]   ;;  %s283_s2 = inlined_call_operand.vmem [shape: f32[1,128], index: 2, kind: input, shape index: {}]   ;;  %s284_s3 = inlined_call_operand.vmem [shape: f32[16,128], index: 3, kind: output, shape index: {}]  }
   0x1   :  { %s15_s14 = sshll.u32 %s282_s1, 4  ;;  %s17_s16 = sshll.u32 %s222_s15, 4  ;;  %s16_s14 = int_to_ptr.hbm [resolvable:$true] %s15_s14  ;;  %s18_s16 = int_to_ptr.vmem [resolvable:$true] %s17_s16 }
   0x2   :  { %s224_s18 = smov 8  }
   0x3   :  { %23 = dma.hbm_to_vmem [thread:$0]  %s16_s14, 2048, %s18_s16, [#allocation3], %s223_s17, %s223_s17, %s224_s18  }
   0x4   :  { %220 = dma.done.wait [#allocation3], 2048  }
   0x5   :  { %221 = vsyncadd [#allocation3], 4294965248  ;;  %v47_v0 = vld [vmem:[#allocation2 + $0x78] sm:$0xff]  ;;  %v46_v1 = vld [vmem:[#allocation2 + $0x70] sm:$0xff] }
   0x6   :  { %52 = vmatpush.msra.mxu0 %v47_v0  ;;  %172 = vmatpush.msra.mxu1 %v47_v0  ;;  %v45_v2 = vld [vmem:[#allocation2 + $0x68] sm:$0xff]  ;;  %v44_v3 = vld [vmem:[#allocation2 + $0x60] sm:$0xff]  ;;  %v43_v4 = vld [vmem:[#allocation2 + $0x58] sm:$0xff] }
   0x7   :  { %v42_v5 = vld [vmem:[#allocation2 + $0x50] sm:$0xff]  ;;  %v41_v6 = vld [vmem:[#allocation2 + $0x48] sm:$0xff]  ;;  %v40_v7 = vld [vmem:[#allocation2 + $0x40] sm:$0xff] }
   0x8   :  { %53 = vmatpush.msra.mxu0 %v46_v1  ;;  %173 = vmatpush.msra.mxu1 %v46_v1  ;;  %v39_v8 = vld [vmem:[#allocation2 + $0x38] sm:$0xff]  ;;  %v38_v9 = vld [vmem:[#allocation2 + $0x30] sm:$0xff]  ;;  %v37_v10 = vld [vmem:[#allocation2 + $0x28] sm:$0xff] }
   0x9   :  { %v36_v11 = vld [vmem:[#allocation2 + $0x20] sm:$0xff]  ;;  %v35_v12 = vld [vmem:[#allocation2 + $0x18] sm:$0xff]  ;;  %v34_v13 = vld [vmem:[#allocation2 + $0x10] sm:$0xff] }
   0xa   :  { %54 = vmatpush.msra.mxu0 %v45_v2  ;;  %174 = vmatpush.msra.mxu1 %v45_v2  ;;  %v33_v14 = vld [vmem:[#allocation2 + $0x8] sm:$0xff]  ;;  %v32_v15 = vld [vmem:[#allocation2] sm:$0xff] }
   0xb   :  { %v30_v16 = vld [vmem:[%s281_s0] sm:$0xff]  ;;  %v31_v17 = vld [vmem:[%s281_s0 + $0x8] sm:$0xff] }
   0xc   :  { %55 = vmatpush.msra.mxu0 %v44_v3  ;;  %175 = vmatpush.msra.mxu1 %v44_v3  ;;  %v191_v18 = vld [vmem:[%s283_s2] ss:$0 sm:$0xff] }
   0xe   :  { %56 = vmatpush.msra.mxu0 %v43_v4  ;;  %176 = vmatpush.msra.mxu1 %v43_v4 }
  0x10   :  { %57 = vmatpush.msra.mxu0 %v42_v5  ;;  %177 = vmatpush.msra.mxu1 %v42_v5 }
  0x12   :  { %58 = vmatpush.msra.mxu0 %v41_v6  ;;  %178 = vmatpush.msra.mxu1 %v41_v6 }
  0x14   :  { %59 = vmatpush.msra.mxu0 %v40_v7  ;;  %179 = vmatpush.msra.mxu1 %v40_v7 }
  0x16   :  { %60 = vmatpush.msra.mxu0 %v39_v8  ;;  %180 = vmatpush.msra.mxu1 %v39_v8 }
  0x18   :  { %61 = vmatpush.msra.mxu0 %v38_v9  ;;  %181 = vmatpush.msra.mxu1 %v38_v9 }
  0x1a   :  { %62 = vmatpush.msra.mxu0 %v37_v10  ;;  %182 = vmatpush.msra.mxu1 %v37_v10 }
  0x1c   :  { %63 = vmatpush.msra.mxu0 %v36_v11  ;;  %183 = vmatpush.msra.mxu1 %v36_v11 }
  0x1e   :  { %64 = vmatpush.msra.mxu0 %v35_v12  ;;  %184 = vmatpush.msra.mxu1 %v35_v12 }
  0x20   :  { %65 = vmatpush.msra.mxu0 %v34_v13  ;;  %185 = vmatpush.msra.mxu1 %v34_v13 }
  0x22   :  { %66 = vmatpush.msra.mxu0 %v33_v14  ;;  %186 = vmatpush.msra.mxu1 %v33_v14 }
  0x24   :  { %67 = vmatpush.msra.mxu0 %v32_v15  ;;  %187 = vmatpush.msra.mxu1 %v32_v15 }
  0x25   :  { %68 = vmatmul.f32.vlgmr.msra.gmra.mxu0 %v30_v16  ;;  %71 = vmatmul.f32.vlgmr.msra.gmra.mxu1 %v31_v17 }
  0xa2   :  { %v69_v19 = vpop.f32.mrf.mxu0  ;;  %v72_v20 = vpop.f32.mrf.mxu1 }
  0xa3   :  { %v257_v21 = vadd.f32 %v191_v18, %v69_v19  ;;  %v259_v22 = vadd.f32 %v191_v18, %v72_v20 }
  0xa5   :  { %v262_v23 = vmul.f32 0.70710677, %v257_v21  ;;  %v265_v24 = vmul.f32 0.70710677, %v259_v22 }
  0xa7   :  { %v79_v25 = vmul.f32 %v262_v23, %v262_v23  ;;  %v119_v26 = vmul.f32 %v265_v24, %v265_v24 }
  0xa9   :  { %v80_v27 = vmin.f32 %v79_v25, 16.0  ;;  %v120_v28 = vmin.f32 %v119_v26, 16.0 }
  0xab   :  { %v81_v29 = vmul.f32 2.1237322e-06, %v80_v27  ;;  %v92_v30 = vmul.f32 3.8918573e-05, %v80_v27  ;;  %v121_v31 = vmul.f32 2.1237322e-06, %v120_v28 }
  0xac   :  { %v132_v32 = vmul.f32 3.8918573e-05, %v120_v28 }
  0xad   :  { %v82_v33 = vadd.f32 0.00028619796, %v81_v29  ;;  %v93_v34 = vadd.f32 0.001143296, %v92_v30  ;;  %v122_v35 = vadd.f32 0.00028619796, %v121_v31 }
  0xae   :  { %v133_v36 = vadd.f32 0.001143296, %v132_v32 }
  0xaf   :  { %v83_v37 = vmul.f32 %v82_v33, %v80_v27  ;;  %v94_v38 = vmul.f32 %v93_v34, %v80_v27  ;;  %v123_v39 = vmul.f32 %v122_v35, %v120_v28  ;;  %v75_v35 = vmul.f32 0.5, %v257_v21 }
  0xb0   :  { %v134_v40 = vmul.f32 %v133_v36, %v120_v28 }
  0xb1   :  { %v84_v41 = vadd.f32 0.0036580483, %v83_v37  ;;  %v95_v42 = vadd.f32 0.014752088, %v94_v38  ;;  %v124_v45 = vadd.f32 0.0036580483, %v123_v39 }
  0xb2   :  { %v135_v43 = vadd.f32 0.014752088, %v134_v40  ;;  %v76_v37 = vmul.f32 0.5, %v259_v22 }
  0xb3   :  { %v96_v44 = vmul.f32 %v95_v42, %v80_v27  ;;  %v85_v47 = vmul.f32 %v84_v41, %v80_v27  ;;  %v125_v51 = vmul.f32 %v124_v45, %v120_v28 }
  0xb4   :  { %v136_v46 = vmul.f32 %v135_v43, %v120_v28 }
  0xb5   :  { %v97_v48 = vadd.f32 0.112945676, %v96_v44  ;;  %v86_v53 = vadd.f32 0.05243302, %v85_v47  ;;  %v126_v57 = vadd.f32 0.05243302, %v125_v51 }
  0xb6   :  { %v137_v49 = vadd.f32 0.112945676, %v136_v46 }
  0xb7   :  { %v98_v50 = vmul.f32 %v97_v48, %v80_v27  ;;  %v87_v59 = vmul.f32 %v86_v53, %v80_v27  ;;  %v127_v62 = vmul.f32 %v126_v57, %v120_v28 }
  0xb8   :  { %v138_v52 = vmul.f32 %v137_v49, %v120_v28 }
  0xb9   :  { %v99_v54 = vadd.f32 0.4994258, %v98_v50  ;;  %v88_v63 = vadd.f32 0.18741608, %v87_v59  ;;  %v128_v0 = vadd.f32 0.18741608, %v127_v62 }
  0xba   :  { %v139_v55 = vadd.f32 0.4994258, %v138_v52 }
  0xbb   :  { %v100_v56 = vmul.f32 %v99_v54, %v80_v27  ;;  %v89_v2 = vmul.f32 %v88_v63, %v80_v27  ;;  %v129_v5 = vmul.f32 %v128_v0, %v120_v28 }
  0xbc   :  { %v140_v58 = vmul.f32 %v139_v55, %v120_v28 }
  0xbd   :  { %v101_v60 = vadd.f32 1.0, %v100_v56  ;;  %v90_v8 = vadd.f32 1.1283791, %v89_v2  ;;  %v130_v14 = vadd.f32 1.1283791, %v129_v5 }
  0xbe   :  { %v141_v61 = vadd.f32 1.0, %v140_v58 }
  0xbf   :  { %192 = vrcp.f32 %v101_v60  ;;  %v113_v9 = vand.u32 2147483648, %v101_v60  ;;  %v111_v12 = vand.u32 2147483647, %v101_v60  ;;  %vm107_vm2 = vweird.f32 %v101_v60 }
  0xc0   :  { %194 = vrcp.f32 %v141_v61  ;;  %v153_v13 = vand.u32 2147483648, %v141_v61  ;;  %v151_v16 = vand.u32 2147483647, %v141_v61  ;;  %vm147_vm4 = vweird.f32 %v141_v61 }
  0xc1   :  { %v114_v18 = vor.u32 1.1754944e-38, %v113_v9  ;;  %v91_v20 = vmul.f32 %v90_v8, %v262_v23  ;;  %vm112_vm5 = vcmp.eq.f32.partialorder %v111_v12, 8.507059e+37  ;;  %v131_v28 = vmul.f32 %v130_v14, %v265_v24 }
  0xc2   :  { %v154_v26 = vor.u32 1.1754944e-38, %v153_v13  ;;  %vm152_vm7 = vcmp.eq.f32.partialorder %v151_v16, 8.507059e+37 }
  0xc5   :  { %v193_v1 = vpop.eup %192 }
  0xc6   :  { %v195_v3 = vpop.eup %194  ;;  %v103_v4 = vmul.f32 %v193_v1, %v101_v60  ;;  %vm108_vm0 = vweird.f32 %v193_v1 }
  0xc7   :  { %v143_v6 = vmul.f32 %v195_v3, %v141_v61  ;;  %vm148_vm1 = vweird.f32 %v195_v3  ;;  %vm109_vm3 = vmor %vm107_vm2, %vm108_vm0 }
  0xc8   :  { %v104_v7 = vsub.f32 1.0, %v103_v4  ;;  %vm149_vm6 = vmor %vm147_vm4, %vm148_vm1 }
  0xc9   :  { %v144_v10 = vsub.f32 1.0, %v143_v6 }
  0xca   :  { %v105_v11 = vmul.f32 %v193_v1, %v104_v7 }
  0xcb   :  { %v145_v15 = vmul.f32 %v195_v3, %v144_v10 }
  0xcc   :  { %v106_v17 = vadd.f32 %v193_v1, %v105_v11 }
  0xcd   :  { %v146_v19 = vadd.f32 %v195_v3, %v145_v15 }
  0xce   :  { %v110_v25 = vsel %vm109_vm3, %v193_v1, %v106_v17 }
  0xcf   :  { %v115_v27 = vsel %vm112_vm5, %v114_v18, %v110_v25  ;;  %v150_v29 = vsel %vm149_vm6, %v195_v3, %v146_v19 }
  0xd0   :  { %v116_v30 = vmul.f32 %v115_v27, %v91_v20  ;;  %v155_v31 = vsel %vm152_vm7, %v154_v26, %v150_v29 }
  0xd1   :  { %v156_v32 = vmul.f32 %v155_v31, %v131_v28 }
  0xd2   :  { %v170_v33 = vclamps-f32 %v116_v30, 1.0 }
  0xd3   :  { %v171_v34 = vclamps-f32 %v156_v32, 1.0 }
  0xd4   :  { %v159_v36 = vadd.f32 1.0, %v170_v33 }
  0xd5   :  { %v160_v23 = vadd.f32 1.0, %v171_v34 }
  0xd6   :  { %v161_v38 = vmul.f32 %v159_v36, %v75_v35 }
  0xd7   :  { %v162_v39 = vmul.f32 %v160_v23, %v76_v37 }
  0xd8   :  { %163 = vst [vmem:[%s284_s3] sm:$0xff] %v161_v38 }
  0xd9   :  { %164 = vst [vmem:[%s284_s3 + $0x8] sm:$0xff] %v162_v39 }
  0xda   :  { %169 = vsyncpa [#allocation3], 1 }

</bundles_post_ra>
